<compile_context>
chip_gen: v5e
topology: v5e:2x2
jax: 0.10.0
libtpu: 0.0.40
codegen_flags: <defaults>
</compile_context>

<pallas_src>
import functools

import jax
import jax.numpy as jnp
from jax.experimental import pallas as pl
from jax.experimental.pallas import tpu as pltpu

_LANES = 128  # lane width of the per-tile partial-sum output block


def _tversky_tp_kernel(x_ref, t_ref, out_ref, *, n_total, block_n):
    """Per-tile partial sum of softmax probability at the target class."""
    x = x_ref[...].astype(jnp.float32)            # (B, C, TN) logits (cast in-kernel)
    t = t_ref[...]                                # (B, TN) int32 labels
    B, C, TN = x.shape

    # Numerically-stable softmax pieces over the class axis (dim 1).
    # No full softmax tensor is materialized.
    m = jnp.max(x, axis=1, keepdims=True)         # (B, 1, TN)
    e = jnp.exp(x - m)                            # (B, C, TN)
    s = jnp.sum(e, axis=1)                        # (B, TN)

    # Fused one-hot gather: select e at the target class, no f32 one-hot tensor.
    class_iota = jax.lax.broadcasted_iota(jnp.int32, (B, C, TN), 1)
    e_at_t = jnp.sum(jnp.where(class_iota == t[:, None, :], e, 0.0), axis=1)  # (B, TN)
    p_at_t = e_at_t / s                           # softmax prob of the true class

    # Mask padded positions of a ragged last tile (static no-op when N % TN == 0).
    if n_total % block_n != 0:
        base = pl.program_id(0) * block_n
        pos = base + jax.lax.broadcasted_iota(jnp.int32, (B, TN), 1)
        p_at_t = jnp.where(pos < n_total, p_at_t, 0.0)

    tp_part = jnp.sum(p_at_t, axis=1, keepdims=True)             # (B, 1)
    out_ref[...] = jnp.broadcast_to(tp_part[None, :, :], (1, B, _LANES))


def tversky_loss(logits, target, *, alpha=0.2, beta=0.8, eps=1e-6, block_n=None):
    """logits: (B, C, N) float (any dtype); target: (B, N) integer class ids in [0, C)."""
    B, C, N = logits.shape
    target = target.astype(jnp.int32)

    # Tile size: biggest that keeps the per-tile f32 working set modest so
    # double-buffered inputs + temporaries fit even v5e's 16 MiB scoped VMEM
    # (and v7x's 64 MiB physical VMEM). 512-2048 lanes reaches HBM roofline.
    if block_n is None:
        if N <= 2048:
            block_n = N                                  # single full-dim tile
        else:
            budget_elems = (4 * 1024 * 1024) // 4        # ~4 MiB of f32 (B,C,TN) temps
            tn = max(128, min(2048, budget_elems // max(1, B * C)))
            block_n = (tn // 128) * 128
    block_n = min(block_n, N)
    num_tiles = pl.cdiv(N, block_n)

    kernel = functools.partial(_tversky_tp_kernel, n_total=N, block_n=block_n)

    cost = pl.CostEstimate(
        flops=6 * B * C * N,
        transcendentals=B * C * N,
        bytes_accessed=(logits.size * logits.dtype.itemsize
                        + target.size * 4
                        + num_tiles * B * _LANES * 4),
    )

    partials = pl.pallas_call(
        kernel,
        out_shape=jax.ShapeDtypeStruct((num_tiles, B, _LANES), jnp.float32),
        grid=(num_tiles,),
        in_specs=[
            pl.BlockSpec((B, C, block_n), lambda n: (0, 0, n)),
            pl.BlockSpec((B, block_n), lambda n: (0, n)),
        ],
        out_specs=pl.BlockSpec((1, B, _LANES), lambda n: (n, 0, 0)),
        compiler_params=pltpu.CompilerParams(dimension_semantics=("parallel",)),
        cost_estimate=cost,
    )(logits, target)

    # Tiny scalar epilogue in plain JAX (runs once, not per tile).
    tp = jnp.sum(partials[:, :, 0], axis=0)       # (B,)
    n_f = jnp.float32(N)
    fp = n_f - tp   # sum over classes of softmax is 1 per position -> N per batch
    fn = n_f - tp   # one-hot sums to exactly N per batch
    tversky = tp / (tp + alpha * fp + beta * fn + eps)
    return jnp.mean(1.0 - tversky)


def _reference(logits, target):
    """Pure-JAX reference mirroring the PyTorch TverskyLoss module."""
    alpha, beta, eps = 0.2, 0.8, 1e-6
    logits = logits.astype(jnp.float32)
    B, C, N = logits.shape
    p = jax.nn.softmax(logits, axis=1)                      # (B, C, N)
    p = jnp.swapaxes(p, 1, 2)                               # (B, N, C)
    onehot = jax.nn.one_hot(target, C, dtype=jnp.float32)   # (B, N, C)
    tp = jnp.sum(p * onehot, axis=(1, 2))
    fp = jnp.sum(p * (1.0 - onehot), axis=(1, 2))
    fn = jnp.sum((1.0 - p) * onehot, axis=(1, 2))
    tversky = tp / (tp + alpha * fp + beta * fn + eps)
    return jnp.mean(1.0 - tversky)


if __name__ == "__main__":
    key = jax.random.PRNGKey(0)
    k1, k2, k3, k4 = jax.random.split(key, 4)

    # Small case: B=2, C=4, 16x16 spatial flattened -> N=256 (single tile).
    B, C, N = 2, 4, 16 * 16
    logits = jax.random.normal(k1, (B, C, N), dtype=jnp.float32)
    target = jax.random.randint(k2, (B, N), 0, C, dtype=jnp.int32)
    loss = jax.block_until_ready(tversky_loss(logits, target))
    ref = _reference(logits, target)
    assert jnp.allclose(loss, ref, rtol=1e-5, atol=1e-5), (loss, ref)

    # Multi-tile case with a ragged last tile (exercises grid + position masking).
    N2 = 1000
    logits2 = jax.random.normal(k3, (B, C, N2), dtype=jnp.float32)
    target2 = jax.random.randint(k4, (B, N2), 0, C, dtype=jnp.int32)
    loss2 = jax.block_until_ready(tversky_loss(logits2, target2, block_n=384))
    ref2 = _reference(logits2, target2)
    assert jnp.allclose(loss2, ref2, rtol=1e-5, atol=1e-5), (loss2, ref2)

    print("KERNEL_OK")
</pallas_src>

<mosaic_0001>
module attributes {stable_mosaic.version = 11 : i64} {
  func.func @_tversky_tp_kernel(%arg0: i32, %arg1: memref<2x4x256xf32, #tpu.memory_space<vmem>>, %arg2: memref<2x256xi32, #tpu.memory_space<vmem>>, %arg3: memref<1x2x128xf32, #tpu.memory_space<vmem>>) attributes {dimension_semantics = [#tpu.dimension_semantics<parallel>], iteration_bounds = array<i64: 1>, scalar_prefetch = 0 : i64, scratch_operands = 0 : i64, tpu.core_type = #tpu.core_type<tc>, window_params = [{transform_indices = @transform_0, window_bounds = array<i64: 2, 4, 256>}, {transform_indices = @transform_1, window_bounds = array<i64: 2, 256>}, {transform_indices = @transform_2, window_bounds = array<i64: 1, 2, 128>}]} {
    %c0 = arith.constant 0 : index
    %c0_0 = arith.constant 0 : index
    %c0_1 = arith.constant 0 : index
    %0 = vector.load %arg1[%c0, %c0_0, %c0_1] : memref<2x4x256xf32, #tpu.memory_space<vmem>>, vector<2x4x256xf32>
    %c0_2 = arith.constant 0 : index
    %c0_3 = arith.constant 0 : index
    %1 = vector.load %arg2[%c0_2, %c0_3] : memref<2x256xi32, #tpu.memory_space<vmem>>, vector<2x256xi32>
    %cst = arith.constant dense<0xFF800000> : vector<2x256xf32>
    %2 = vector.multi_reduction <maximumf>, %0, %cst [1] : vector<2x4x256xf32> to vector<2x256xf32>
    %3 = vector.shape_cast %2 : vector<2x256xf32> to vector<2x1x256xf32>
    %4 = vector.broadcast %3 : vector<2x1x256xf32> to vector<2x4x256xf32>
    %5 = arith.subf %0, %4 : vector<2x4x256xf32>
    %6 = math.exp %5 : vector<2x4x256xf32>
    %cst_4 = arith.constant dense<0.000000e+00> : vector<2x256xf32>
    %7 = vector.multi_reduction <add>, %6, %cst_4 [1] : vector<2x4x256xf32> to vector<2x256xf32>
    %8 = tpu.iota {dimensions = array<i32: 1>} : vector<2x4x256xi32>
    %9 = vector.shape_cast %1 : vector<2x256xi32> to vector<2x1x256xi32>
    %10 = vector.broadcast %9 : vector<2x1x256xi32> to vector<2x4x256xi32>
    %11 = arith.cmpi eq, %8, %10 : vector<2x4x256xi32>
    %cst_5 = arith.constant 0.000000e+00 : f32
    %12 = vector.broadcast %cst_5 : f32 to vector<2x4x256xf32>
    %13 = arith.select %11, %6, %12 : vector<2x4x256xi1>, vector<2x4x256xf32>
    %cst_6 = arith.constant dense<0.000000e+00> : vector<2x256xf32>
    %14 = vector.multi_reduction <add>, %13, %cst_6 [1] : vector<2x4x256xf32> to vector<2x256xf32>
    %15 = arith.divf %14, %7 : vector<2x256xf32>
    %cst_7 = arith.constant dense<0.000000e+00> : vector<2xf32>
    %16 = vector.multi_reduction <add>, %15, %cst_7 [1] : vector<2x256xf32> to vector<2xf32>
    %17 = vector.shape_cast %16 : vector<2xf32> to vector<2x1xf32>
    %18 = vector.shape_cast %17 : vector<2x1xf32> to vector<1x2x1xf32>
    %19 = vector.shape_cast %18 : vector<1x2x1xf32> to vector<1x2x1xf32>
    %20 = vector.broadcast %19 : vector<1x2x1xf32> to vector<1x2x128xf32>
    %c0_8 = arith.constant 0 : index
    %c0_9 = arith.constant 0 : index
    %c0_10 = arith.constant 0 : index
    %21 = vector.load %arg3[%c0_8, %c0_9, %c0_10] : memref<1x2x128xf32, #tpu.memory_space<vmem>>, vector<1x2x128xf32>
    tpu.vector_store %arg3[%c0_8, %c0_9, %c0_10], %20 {strides = array<i32>} : memref<1x2x128xf32, #tpu.memory_space<vmem>>, vector<1x2x128xf32>,
    return
  }
  func.func @transform_0(%arg0: i32) -> (i32, i32, i32) {
    %c0_i32 = arith.constant 0 : i32
    %c0_i32_0 = arith.constant 0 : i32
    %c0_i32_1 = arith.constant 0 : i32
    return %c0_i32, %c0_i32_0, %arg0 : i32, i32, i32
  }
  func.func @transform_1(%arg0: i32) -> (i32, i32) {
    %c0_i32 = arith.constant 0 : i32
    %c0_i32_0 = arith.constant 0 : i32
    return %c0_i32, %arg0 : i32, i32
  }
  func.func @transform_2(%arg0: i32) -> (i32, i32, i32) {
    %c0_i32 = arith.constant 0 : i32
    %c0_i32_0 = arith.constant 0 : i32
    %c0_i32_1 = arith.constant 0 : i32
    return %arg0, %c0_i32, %c0_i32_0 : i32, i32, i32
  }
}

</mosaic_0001>

<bundles_post_ra>
// kernel: tpu_custom_call.1
= control target key start
LH: loop header
LB: loop body
LE: loop exit
PB: predicated region body
PF: predicated region fallthrough
CT: control target
= control target key end

     0   :  { %7 = vsyncpa [#allocation3], 0  ;;  %s501_s0 = inlined_call_operand.hbm [shape: f32[2,4,256], index: 0, kind: input, shape index: {}]   ;;  %s502_s1 = inlined_call_operand.hbm [shape: s32[2,256], index: 1, kind: input, shape index: {}]   ;;  %s503_s2 = inlined_call_operand.hbm [shape: f32[1,2,128], index: 2, kind: output, shape index: {}]  }
   0x1   :  { %8 = vsyncpa [#allocation6], 0 }
   0x2   :  { %9 = vsyncpa [#allocation4], 0  ;;  %s14_s11 = sshll.u32 %s501_s0, 4  ;;  %s400_s12 = smov [#allocation2]   ;;  %s15_s11 = int_to_ptr.hbm [resolvable:$true] %s14_s11 }
   0x3   :  { %s16_s13 = sshll.u32 %s400_s12, 4  ;;  %s28_s16 = sshll.u32 %s502_s1, 4  ;;  %s17_s13 = int_to_ptr.vmem [resolvable:$true] %s16_s13  ;;  %s29_s16 = int_to_ptr.hbm [resolvable:$true] %s28_s16 }
   0x4   :  { %s401_s17 = smov 128   ;;  %s402_s18 = smov 8  }
   0x5   :  { %22 = dma.hbm_to_vmem [thread:$0]  %s15_s11, 256, %s17_s13, [#allocation3], %s401_s17, %s401_s17, %s402_s18  }
   0x6   :  { %s403_s19 = smov [#allocation5]  }
   0x7   :  { %s30_s20 = sshll.u32 %s403_s19, 4  ;;  %s31_s20 = int_to_ptr.vmem [resolvable:$true] %s30_s20 }
   0x8   :  { %33 = dma.hbm_to_vmem [thread:$0]  %s29_s16, 64, %s31_s20, [#allocation6]  }
   0x9   :  { %394 = dma.done.wait [#allocation3], 256  }
   0xa   :  { %395 = vsyncadd [#allocation3], 4294967040 }
   0xb   :  { %396 = dma.done.wait [#allocation6], 64  }
   0xc   :  { %397 = vsyncadd [#allocation6], 4294967232  ;;  %v42_v0 = vld [vmem:[#allocation2] sm:$0xff]  ;;  %v43_v1 = vld [vmem:[#allocation2 + $0x8] sm:$0xff]  ;;  %vm58_vm0 = vcmask 1043456   ;;  %vm155_vm1 = vcmask 1041409   ;;  %v144_v50 = vlaneseq }
   0xd   :  { %47 = vst [vmem:[#allocation1] ss:$2 sm:$0xff] %v42_v0  ;;  %v44_v42 = vld [vmem:[#allocation5] sm:$0xf]  ;;  %vm157_vm2 = vcmask 1043459   ;;  %vm159_vm3 = vcmask 1042433  }
   0xe   :  { %51 = vst [vmem:[#allocation1 + $0x10] ss:$2 sm:$0xff] %v43_v1  ;;  %v146_v43 = vrot.slane %v44_v42, 1  ;;  %v147_v44 = vrot.slane %v44_v42, 2  ;;  %v148_v45 = vrot.slane %v44_v42, 3  ;;  %vm149_vm4 = vcmask 1040384  }
   0xf   :  { %vm151_vm5 = vcmask 1042434   ;;  %vm153_vm6 = vcmask 1041408   ;;  %v145_v54 = vshrl.u32 %v144_v50, 7  ;;  %s404_s0 = smov [#allocation7]   ;;  %s294_s23 = sshll.u32 %s503_s2, 4  ;;  %s295_s23 = int_to_ptr.hbm [resolvable:$true] %s294_s23 }
  0x10   :  { %v156_v48 = vsel %vm155_vm1, %v44_v42, %v146_v43  ;;  %v158_v49 = vsel %vm157_vm2, %v147_v44, %v148_v45  ;;  %v150_v52 = vsel %vm149_vm4, %v44_v42, %v146_v43  ;;  %v152_v53 = vsel %vm151_vm5, %v147_v44, %v148_v45  ;;  %s292_s1 = sshll.u32 %s404_s0, 4  ;;  %s293_s1 = int_to_ptr.vmem [resolvable:$true] %s292_s1 }
  0x11   :  { %v160_v51 = vsel %vm159_vm3, %v156_v48, %v158_v49  ;;  %v154_v60 = vsel %vm153_vm6, %v150_v52, %v152_v53 }
  0x12   :  { %v161_v55 = vrot.slane %v160_v51, 1 }
  0x14   :  { %v48_v2 = vld.sshfl [vmem:[#allocation1] sm:$0xff pattern:$0x75316420]  ;;  %v49_v3 = vld.sshfl [vmem:[#allocation1 + $0x8] sm:$0xff pattern:$0x75316420] }
  0x15   :  { %v52_v4 = vld.sshfl [vmem:[#allocation1 + $0x10] sm:$0xff pattern:$0x75316420]  ;;  %v53_v5 = vld.sshfl [vmem:[#allocation1 + $0x18] sm:$0xff pattern:$0x75316420] }
  0x16   :  { %v59_v6 = vsel %vm58_vm0, %v48_v2, -inf  ;;  %v66_v7 = vsel %vm58_vm0, %v49_v3, -inf  ;;  %v73_v8 = vsel %vm58_vm0, %v52_v4, -inf  ;;  %v80_v9 = vsel %vm58_vm0, %v53_v5, -inf }
  0x17   :  { %v60_v10 = vrot.slane %v59_v6, 4  ;;  %v67_v11 = vrot.slane %v66_v7, 4  ;;  %v74_v12 = vrot.slane %v73_v8, 4  ;;  %v81_v13 = vrot.slane %v80_v9, 4 }
  0x18   :  { %v162_v5 = vperm.slane %v154_v60, 0 }
  0x19   :  { %v61_v14 = vmax.f32 %v59_v6, %v60_v10  ;;  %v68_v15 = vmax.f32 %v66_v7, %v67_v11  ;;  %v75_v16 = vmax.f32 %v73_v8, %v74_v12  ;;  %v82_v17 = vmax.f32 %v80_v9, %v81_v13 }
  0x1a   :  { %v163_v6 = vperm.slane %v154_v60, 1  ;;  %v164_v7 = vperm.slane %v161_v55, 0  ;;  %v165_v8 = vperm.slane %v161_v55, 1  ;;  %vm438_vm7 = vcmp.eq.s32.totalorder %v145_v54, %v162_v5 }
  0x1b   :  { %v62_v18 = vrot.slane %v61_v14, 2  ;;  %v69_v19 = vrot.slane %v68_v15, 2  ;;  %v76_v20 = vrot.slane %v75_v16, 2  ;;  %v83_v21 = vrot.slane %v82_v17, 2 }
  0x1c   :  { %vm442_vm8 = vcmp.eq.s32.totalorder %v145_v54, %v163_v6  ;;  %vm168_vm9 = vcmp.eq.s32.totalorder %v145_v54, %v164_v7  ;;  %vm169_vm10 = vcmp.eq.s32.totalorder %v145_v54, %v165_v8 }
  0x1d   :  { %v63_v22 = vmax.f32 %v61_v14, %v62_v18  ;;  %v70_v23 = vmax.f32 %v68_v15, %v69_v19  ;;  %v77_v24 = vmax.f32 %v75_v16, %v76_v20  ;;  %v84_v25 = vmax.f32 %v82_v17, %v83_v21 }
  0x1f   :  { %v64_v26 = vrot.slane %v63_v22, 1  ;;  %v71_v27 = vrot.slane %v70_v23, 1  ;;  %v78_v28 = vrot.slane %v77_v24, 1  ;;  %v85_v29 = vrot.slane %v84_v25, 1 }
  0x21   :  { %v65_v30 = vmax.f32 %v63_v22, %v64_v26  ;;  %v72_v31 = vmax.f32 %v70_v23, %v71_v27  ;;  %v79_v32 = vmax.f32 %v77_v24, %v78_v28  ;;  %v86_v33 = vmax.f32 %v84_v25, %v85_v29 }
  0x23   :  { %v91_v34 = vrot.slane %v72_v31, 4  ;;  %v92_v35 = vrot.slane %v86_v33, 4 }
  0x25   :  { %v93_v36 = vsel %vm58_vm0, %v65_v30, %v91_v34  ;;  %v94_v37 = vsel %vm58_vm0, %v79_v32, %v92_v35 }
  0x26   :  { %v97_v38 = vsub.f32 %v42_v0, %v93_v36  ;;  %v98_v39 = vsub.f32 %v43_v1, %v94_v37 }
  0x28   :  { %v99_v40 = vmul.f32 1.442695, %v97_v38  ;;  %v101_v41 = vmul.f32 1.442695, %v98_v39 }
  0x2a   :  { %310 = vpow2.f32 %v99_v40 }
  0x2b   :  { %312 = vpow2.f32 %v101_v41 }
  0x30   :  { %v311_v46 = vpop.eup %310 }
  0x31   :  { %v313_v47 = vpop.eup %312  ;;  %105 = vst [vmem:[#allocation1] ss:$2 sm:$0xff] %v311_v46 }
  0x32   :  { %109 = vst [vmem:[#allocation1 + $0x10] ss:$2 sm:$0xff] %v313_v47 }
  0x38   :  { %v106_v56 = vld.sshfl [vmem:[#allocation1] sm:$0xff pattern:$0x75316420]  ;;  %v107_v57 = vld.sshfl [vmem:[#allocation1 + $0x8] sm:$0xff pattern:$0x75316420] }
  0x39   :  { %v110_v58 = vld.sshfl [vmem:[#allocation1 + $0x10] sm:$0xff pattern:$0x75316420]  ;;  %v111_v59 = vld.sshfl [vmem:[#allocation1 + $0x18] sm:$0xff pattern:$0x75316420] }
  0x3a   :  { %v116_v61 = vsel %vm58_vm0, %v106_v56, 0.0  ;;  %v123_v62 = vsel %vm58_vm0, %v107_v57, 0.0  ;;  %v130_v63 = vsel %vm58_vm0, %v110_v58, 0.0  ;;  %v137_v0 = vsel %vm58_vm0, %v111_v59, 0.0  ;;  %170 = vst [vmem:[#allocation1] ss:$2 sm:$0xff] %v311_v46 }
  0x3b   :  { %v117_v1 = vrot.slane %v116_v61, 4  ;;  %v124_v2 = vrot.slane %v123_v62, 4  ;;  %v131_v3 = vrot.slane %v130_v63, 4  ;;  %v138_v4 = vrot.slane %v137_v0, 4  ;;  %174 = vst [vmem:[#allocation1 + $0x10] ss:$2 sm:$0xff] %v313_v47 }
  0x3d   :  { %v118_v9 = vadd.f32 %v117_v1, %v116_v61  ;;  %v125_v10 = vadd.f32 %v124_v2, %v123_v62  ;;  %v132_v11 = vadd.f32 %v131_v3, %v130_v63  ;;  %v139_v12 = vadd.f32 %v138_v4, %v137_v0 }
  0x3f   :  { %v119_v13 = vrot.slane %v118_v9, 2  ;;  %v126_v14 = vrot.slane %v125_v10, 2  ;;  %v133_v15 = vrot.slane %v132_v11, 2  ;;  %v140_v16 = vrot.slane %v139_v12, 2 }
  0x41   :  { %v120_v19 = vadd.f32 %v119_v13, %v118_v9  ;;  %v127_v20 = vadd.f32 %v126_v14, %v125_v10  ;;  %v134_v21 = vadd.f32 %v133_v15, %v132_v11  ;;  %v171_v22 = vld.sshfl [vmem:[#allocation1] sm:$0xff pattern:$0x75316420]  ;;  %v172_v23 = vld.sshfl [vmem:[#allocation1 + $0x8] sm:$0xff pattern:$0x75316420]  ;;  %v141_v35 = vadd.f32 %v140_v16, %v139_v12 }
  0x42   :  { %v175_v24 = vld.sshfl [vmem:[#allocation1 + $0x10] sm:$0xff pattern:$0x75316420]  ;;  %v176_v25 = vld.sshfl [vmem:[#allocation1 + $0x18] sm:$0xff pattern:$0x75316420] }
  0x43   :  { %v121_v26 = vrot.slane %v120_v19, 1  ;;  %v128_v27 = vrot.slane %v127_v20, 1  ;;  %v135_v28 = vrot.slane %v134_v21, 1  ;;  %v181_v29 = vsel %vm438_vm7, %v171_v22, 0.0 }
  0x44   :  { %v182_v30 = vsel %vm442_vm8, %v172_v23, 0.0  ;;  %v183_v31 = vsel %vm168_vm9, %v175_v24, 0.0  ;;  %v184_v32 = vsel %vm169_vm10, %v176_v25, 0.0  ;;  %v185_v36 = vsel %vm58_vm0, %v181_v29, 0.0 }
  0x45   :  { %v122_v33 = vadd.f32 %v121_v26, %v120_v19  ;;  %v129_v34 = vadd.f32 %v128_v27, %v127_v20  ;;  %v192_v37 = vsel %vm58_vm0, %v182_v30, 0.0  ;;  %v199_v38 = vsel %vm58_vm0, %v183_v31, 0.0 }
  0x46   :  { %v206_v39 = vsel %vm58_vm0, %v184_v32, 0.0  ;;  %v186_v40 = vrot.slane %v185_v36, 4  ;;  %v193_v41 = vrot.slane %v192_v37, 4  ;;  %v200_v42 = vrot.slane %v199_v38, 4 }
  0x47   :  { %v207_v43 = vrot.slane %v206_v39, 4  ;;  %v136_v44 = vadd.f32 %v135_v28, %v134_v21  ;;  %314 = vrcp.f32 %v122_v33  ;;  %v142_v47 = vrot.slane %v141_v35, 1 }
  0x48   :  { %v187_v45 = vadd.f32 %v186_v40, %v185_v36  ;;  %v201_v46 = vadd.f32 %v200_v42, %v199_v38  ;;  %316 = vrcp.f32 %v129_v34  ;;  %v194_v48 = vadd.f32 %v193_v41, %v192_v37 }
  0x49   :  { %v208_v49 = vadd.f32 %v207_v43, %v206_v39  ;;  %v222_v50 = vand.u32 2147483647, %v122_v33  ;;  %318 = vrcp.f32 %v136_v44  ;;  %v454_v54 = vadd.f32 %v142_v47, %v141_v35 }
  0x4a   :  { %v188_v51 = vrot.slane %v187_v45, 2  ;;  %v202_v52 = vrot.slane %v201_v46, 2  ;;  %v195_v55 = vrot.slane %v194_v48, 2  ;;  %vm218_vm11 = vweird.f32 %v122_v33 }
  0x4b   :  { %v209_v56 = vrot.slane %v208_v49, 2  ;;  %v224_v57 = vand.u32 2147483648, %v122_v33  ;;  %vm456_vm12 = vcmp.eq.f32.partialorder %v222_v50, 8.507059e+37  ;;  %vm233_vm13 = vweird.f32 %v129_v34 }
  0x4c   :  { %v237_v61 = vand.u32 2147483647, %v129_v34  ;;  %v189_v62 = vadd.f32 %v188_v51, %v187_v45  ;;  %v203_v63 = vadd.f32 %v202_v52, %v201_v46  ;;  %v239_v0 = vand.u32 2147483648, %v129_v34 }
  0x4d   :  { %v315_v53 = vpop.eup %314  ;;  %vm248_vm14 = vweird.f32 %v136_v44  ;;  %320 = vrcp.f32 %v454_v54  ;;  %v196_v4 = vadd.f32 %v195_v55, %v194_v48  ;;  %v210_v5 = vadd.f32 %v209_v56, %v208_v49 }
  0x4e   :  { %v317_v58 = vpop.eup %316  ;;  %v214_v59 = vmul.f32 %v315_v53, %v122_v33  ;;  %vm219_vm15 = vweird.f32 %v315_v53  ;;  %v252_v7 = vand.u32 2147483647, %v136_v44  ;;  %v254_v10 = vand.u32 2147483648, %v136_v44 }
  0x4f   :  { %v319_v1 = vpop.eup %318  ;;  %v229_v3 = vmul.f32 %v317_v58, %v129_v34  ;;  %vm234_vm0 = vweird.f32 %v317_v58  ;;  %v190_v11 = vrot.slane %v189_v62, 1  ;;  %v204_v12 = vrot.slane %v203_v63, 1  ;;  %vm462_vm2 = vmor %vm218_vm11, %vm219_vm15 }
  0x50   :  { %v215_v2 = vsub.f32 1.0, %v214_v59  ;;  %v244_v6 = vmul.f32 %v319_v1, %v136_v44  ;;  %vm249_vm3 = vweird.f32 %v319_v1  ;;  %v225_v16 = vor.u32 1.1754944e-38, %v224_v57  ;;  %vm471_vm5 = vmor %vm233_vm13, %vm234_vm0 }
  0x51   :  { %v230_v9 = vsub.f32 1.0, %v229_v3  ;;  %vm466_vm4 = vcmp.eq.f32.partialorder %v237_v61, 8.507059e+37  ;;  %v197_v19 = vrot.slane %v196_v4, 1  ;;  %v211_v20 = vrot.slane %v210_v5, 1  ;;  %vm478_vm7 = vmor %vm248_vm14, %vm249_vm3 }
  0x52   :  { %v216_v8 = vmul.f32 %v315_v53, %v215_v2  ;;  %v245_v14 = vsub.f32 1.0, %v244_v6  ;;  %v240_v22 = vor.u32 1.1754944e-38, %v239_v0  ;;  %vm253_vm8 = vcmp.eq.f32.partialorder %v252_v7, 8.507059e+37 }
  0x53   :  { %v231_v17 = vmul.f32 %v317_v58, %v230_v9  ;;  %v321_v24 = vpop.eup %320  ;;  %v255_v28 = vor.u32 1.1754944e-38, %v254_v10  ;;  %v191_v29 = vadd.f32 %v190_v11, %v189_v62  ;;  %v205_v30 = vadd.f32 %v204_v12, %v203_v63 }
  0x54   :  { %v217_v15 = vadd.f32 %v315_v53, %v216_v8  ;;  %v246_v23 = vmul.f32 %v319_v1, %v245_v14  ;;  %v259_v32 = vmul.f32 %v321_v24, %v454_v54  ;;  %vm263_vm9 = vweird.f32 %v454_v54 }
  0x55   :  { %v232_v26 = vadd.f32 %v317_v58, %v231_v17  ;;  %v267_v34 = vand.u32 2147483647, %v454_v54  ;;  %v269_v35 = vand.u32 2147483648, %v454_v54  ;;  %vm264_vm10 = vweird.f32 %v321_v24 }
  0x56   :  { %v221_v25 = vsel %vm462_vm2, %v315_v53, %v217_v15  ;;  %v247_v31 = vadd.f32 %v319_v1, %v246_v23  ;;  %v260_v38 = vsub.f32 1.0, %v259_v32  ;;  %v198_v40 = vadd.f32 %v197_v19, %v196_v4  ;;  %vm265_vm11 = vmor %vm263_vm9, %vm264_vm10 }
  0x57   :  { %v226_v33 = vsel %vm456_vm12, %v225_v16, %v221_v25  ;;  %v236_v36 = vsel %vm471_vm5, %v317_v58, %v232_v26  ;;  %v270_v45 = vor.u32 1.1754944e-38, %v269_v35  ;;  %v212_v46 = vadd.f32 %v211_v20, %v210_v5 }
  0x58   :  { %v251_v37 = vsel %vm478_vm7, %v319_v1, %v247_v31  ;;  %v227_v41 = vmul.f32 %v226_v33, %v191_v29  ;;  %v261_v43 = vmul.f32 %v321_v24, %v260_v38  ;;  %v241_v44 = vsel %vm466_vm4, %v240_v22, %v236_v36 }
  0x59   :  { %v256_v39 = vsel %vm253_vm8, %v255_v28, %v251_v37  ;;  %vm268_vm12 = vcmp.eq.f32.partialorder %v267_v34, 8.507059e+37  ;;  %v242_v48 = vmul.f32 %v241_v44, %v198_v40 }
  0x5a   :  { %v257_v42 = vmul.f32 %v256_v39, %v205_v30  ;;  %v262_v47 = vadd.f32 %v321_v24, %v261_v43 }
  0x5c   :  { %v266_v49 = vsel %vm265_vm11, %v321_v24, %v262_v47  ;;  %v277_v50 = vsel %vm155_vm1, %v257_v42, %v227_v41 }
  0x5d   :  { %v271_v51 = vsel %vm268_vm12, %v270_v45, %v266_v49  ;;  %v281_v53 = vsel %vm153_vm6, %v277_v50, 0.0 }
  0x5e   :  { %v272_v52 = vmul.f32 %v271_v51, %v212_v46 }
  0x60   :  { %v278_v54 = vsel %vm155_vm1, %v272_v52, %v242_v48 }
  0x61   :  { %v282_v55 = vsel %vm153_vm6, %v278_v54, 0.0 }
  0x62   :  { %v283_v56 = vadd.f32 %v282_v55, %v281_v53 }
  0x64   :  { %284 = vadd.xlane.f32.xlu0 %v283_v56 }
  0xd7   :  { %v285_v57 = vpop.xlane.xlu0 %284 }
  0xd8   :  { %286 = vst [vmem:[#allocation7] sm:$0x3] %v285_v57 }
  0xd9   :  { %297 = dma.vmem_to_hbm [thread:$0]  %s293_s1, 32, %s295_s23, [#allocation4]  }
  0xda   :  { %398 = dma.done.wait [#allocation4], 32  }
  0xdb   :  { %399 = vsyncadd [#allocation4], 4294967264 }
  0xdc   :  { %302 = vsyncpa [#allocation3], 1 }
  0xdd   :  { %303 = vsyncpa [#allocation6], 1 }
  0xde   :  { %304 = vsyncpa [#allocation4], 1 }

</bundles_post_ra>
